<compile_context>
chip_gen: v7x
topology: tpu7x:2x2x1
jax: 0.10.0
libtpu: 0.0.40
codegen_flags: <defaults>
</compile_context>

<pallas_src>
import functools

import jax
import jax.numpy as jnp
from jax import lax
from jax.experimental import pallas as pl
from jax.experimental.pallas import tpu as pltpu

TB = 128            # batch tile (rows fed to the MXU per grid step)
OUT_PAD = 128       # lane-dense padded class dimension (true classes = 9)
_CONTRACT_LAST = (((1,), (1,)), ((), ()))   # x @ W.T for PyTorch (out, in) weights


def mlp_kernel(x_ref, w1_ref, w2_ref, w3_ref, b_ref, o_ref):
    # fc1 + sigmoid : (TB, 784) x (30, 784)^T -> (TB, 30)
    h1 = lax.dot_general(x_ref[...], w1_ref[...], _CONTRACT_LAST,
                         preferred_element_type=jnp.float32)
    h1 = jax.nn.sigmoid(h1 + b_ref[0:1, 0:30])

    # fc2 + sigmoid : (TB, 30) x (28, 30)^T -> (TB, 28)
    h2 = lax.dot_general(h1.astype(jnp.bfloat16), w2_ref[...], _CONTRACT_LAST,
                         preferred_element_type=jnp.float32)
    h2 = jax.nn.sigmoid(h2 + b_ref[1:2, 0:28])

    # fc3 (zero-padded to 128 output rows) : (TB, 28) x (128, 28)^T -> (TB, 128)
    logits = lax.dot_general(h2.astype(jnp.bfloat16), w3_ref[...], _CONTRACT_LAST,
                             preferred_element_type=jnp.float32)
    # Padded classes carry a -1e30 bias so they vanish under softmax.
    logits = logits + b_ref[2:3, :]

    # softmax over the (lane-dense) class axis
    m = jnp.max(logits, axis=-1, keepdims=True)
    e = jnp.exp(logits - m)
    o_ref[...] = e / jnp.sum(e, axis=-1, keepdims=True)


def pack_params(params):
    """PyTorch-layout params -> kernel operands (bf16 weights, packed f32 biases)."""
    w1, b1, w2, b2, w3, b3 = params           # w*: (out, in), b*: (out,)
    w3p = jnp.zeros((OUT_PAD, 28), jnp.float32).at[:9, :].set(w3)
    b = jnp.zeros((3, OUT_PAD), jnp.float32)
    b = b.at[0, :30].set(jnp.reshape(b1, (-1,)))
    b = b.at[1, :28].set(jnp.reshape(b2, (-1,)))
    b = b.at[2, :].set(-1e30)
    b = b.at[2, :9].set(jnp.reshape(b3, (-1,)))
    return (w1.astype(jnp.bfloat16), w2.astype(jnp.bfloat16),
            w3p.astype(jnp.bfloat16), b)


@functools.partial(jax.jit, static_argnames=())
def mlp_forward_batched(x2d, w1, w2, w3p, b):
    """x2d: (B, 784) f32/bf16 -> (B, 9) softmax probabilities."""
    B = x2d.shape[0]
    b_pad = ((B + TB - 1) // TB) * TB
    xp = jnp.zeros((b_pad, 784), jnp.bfloat16).at[:B, :].set(x2d.astype(jnp.bfloat16))

    out = pl.pallas_call(
        mlp_kernel,
        out_shape=jax.ShapeDtypeStruct((b_pad, OUT_PAD), jnp.float32),
        grid=(b_pad // TB,),
        in_specs=[
            pl.BlockSpec((TB, 784), lambda i: (i, 0)),        # activations: tiled over batch
            pl.BlockSpec((30, 784), lambda i: (0, 0)),        # weights stay resident
            pl.BlockSpec((28, 30), lambda i: (0, 0)),
            pl.BlockSpec((OUT_PAD, 28), lambda i: (0, 0)),
            pl.BlockSpec((3, OUT_PAD), lambda i: (0, 0)),     # packed biases
        ],
        out_specs=pl.BlockSpec((TB, OUT_PAD), lambda i: (i, 0)),
        compiler_params=pltpu.CompilerParams(
            dimension_semantics=("parallel",)),               # split batch across TCs (v7x)
    )(xp, w1, w2, w3p, b)
    return out[:B, :9]


def neural_network_forward(x, params):
    """Reproduces NeuralNetwork.forward: view(1, 784) -> fc1 -> sigmoid
    -> fc2 -> sigmoid -> fc3 -> softmax(dim=1)."""
    x2d = jnp.reshape(x, (1, 784)).astype(jnp.float32)        # x.view(1, 784)
    return mlp_forward_batched(x2d, *pack_params(params))


def init_params(key):
    """Synthetic init matching the module: weights (out, in) ~ N(0, 0.1),
    biases default nn.Linear uniform(-1/sqrt(fan_in), 1/sqrt(fan_in))."""
    ks = jax.random.split(key, 6)
    w1 = 0.1 * jax.random.normal(ks[0], (30, 784), jnp.float32)
    w2 = 0.1 * jax.random.normal(ks[1], (28, 30), jnp.float32)
    w3 = 0.1 * jax.random.normal(ks[2], (9, 28), jnp.float32)
    b1 = jax.random.uniform(ks[3], (30,), jnp.float32, -(784 ** -0.5), 784 ** -0.5)
    b2 = jax.random.uniform(ks[4], (28,), jnp.float32, -(30 ** -0.5), 30 ** -0.5)
    b3 = jax.random.uniform(ks[5], (9,), jnp.float32, -(28 ** -0.5), 28 ** -0.5)
    return (w1, b1, w2, b2, w3, b3)


def reference(x2d, params):
    """Pure-JAX reference using the same bf16-weight / f32-accumulate recipe."""
    w1, b1, w2, b2, w3, b3 = params
    xb = x2d.astype(jnp.bfloat16)
    h1 = jax.nn.sigmoid(
        lax.dot_general(xb, w1.astype(jnp.bfloat16), _CONTRACT_LAST,
                        preferred_element_type=jnp.float32) + b1)
    h2 = jax.nn.sigmoid(
        lax.dot_general(h1.astype(jnp.bfloat16), w2.astype(jnp.bfloat16), _CONTRACT_LAST,
                        preferred_element_type=jnp.float32) + b2)
    logits = lax.dot_general(h2.astype(jnp.bfloat16), w3.astype(jnp.bfloat16),
                             _CONTRACT_LAST, preferred_element_type=jnp.float32) + b3
    return jax.nn.softmax(logits, axis=-1)


if __name__ == "__main__":
    key = jax.random.PRNGKey(0)
    pkey, xkey, bkey = jax.random.split(key, 3)
    params = init_params(pkey)

    # Module semantics: a single 28x28 image, viewed as (1, 784).
    x = jax.random.normal(xkey, (1, 28, 28), jnp.float32)
    out = jax.block_until_ready(neural_network_forward(x, params))
    assert out.shape == (1, 9)
    assert jnp.allclose(jnp.sum(out), 1.0, atol=1e-4)
    ref = reference(jnp.reshape(x, (1, 784)), params)
    assert jnp.allclose(out, ref, atol=2e-3), (out, ref)

    # Batched throughput path: amortize dispatch + weight DMA over many images.
    xb = jax.random.normal(bkey, (256, 784), jnp.float32)
    outb = jax.block_until_ready(mlp_forward_batched(xb, *pack_params(params)))
    refb = reference(xb, params)
    assert outb.shape == (256, 9)
    assert jnp.allclose(jnp.sum(outb, axis=-1), jnp.ones((256,)), atol=1e-4)
    assert jnp.allclose(outb, refb, atol=2e-3)

    print("KERNEL_OK")
</pallas_src>

<mosaic_0001>
module attributes {stable_mosaic.version = 11 : i64} {
  func.func @mlp_kernel(%arg0: i32, %arg1: memref<128x784xbf16, #tpu.memory_space<vmem>>, %arg2: memref<30x784xbf16, #tpu.memory_space<vmem>>, %arg3: memref<28x30xbf16, #tpu.memory_space<vmem>>, %arg4: memref<128x28xbf16, #tpu.memory_space<vmem>>, %arg5: memref<3x128xf32, #tpu.memory_space<vmem>>, %arg6: memref<128x128xf32, #tpu.memory_space<vmem>>) attributes {dimension_semantics = [#tpu.dimension_semantics<parallel>], iteration_bounds = array<i64: 1>, scalar_prefetch = 0 : i64, scratch_operands = 0 : i64, tpu.core_type = #tpu.core_type<tc>, window_params = [{transform_indices = @transform_0, window_bounds = array<i64: 128, 784>}, {pipeline_mode = #tpu.pipeline_mode<synchronous>, transform_indices = @transform_1, window_bounds = array<i64: 30, 784>}, {pipeline_mode = #tpu.pipeline_mode<synchronous>, transform_indices = @transform_2, window_bounds = array<i64: 28, 30>}, {pipeline_mode = #tpu.pipeline_mode<synchronous>, transform_indices = @transform_3, window_bounds = array<i64: 128, 28>}, {pipeline_mode = #tpu.pipeline_mode<synchronous>, transform_indices = @transform_4, window_bounds = array<i64: 3, 128>}, {transform_indices = @transform_5, window_bounds = array<i64: 128, 128>}]} {
    %c0 = arith.constant 0 : index
    %c0_0 = arith.constant 0 : index
    %0 = vector.load %arg1[%c0, %c0_0] : memref<128x784xbf16, #tpu.memory_space<vmem>>, vector<128x784xbf16>
    %c0_1 = arith.constant 0 : index
    %c0_2 = arith.constant 0 : index
    %1 = vector.load %arg2[%c0_1, %c0_2] : memref<30x784xbf16, #tpu.memory_space<vmem>>, vector<30x784xbf16>
    %cst = arith.constant dense<0.000000e+00> : vector<128x30xf32>
    %2 = tpu.matmul %0, %1, %cst {dimension_numbers = #tpu.dot_dimension_numbers<[1], [1], [0], [0], [0, 0, 1, 0], [], []>} : vector<128x784xbf16>, vector<30x784xbf16>, vector<128x30xf32> -> vector<128x30xf32>
    %c0_3 = arith.constant 0 : index
    %c0_4 = arith.constant 0 : index
    %3 = vector.load %arg5[%c0_3, %c0_4] : memref<3x128xf32, #tpu.memory_space<vmem>>, vector<1x30xf32>
    %4 = vector.broadcast %3 : vector<1x30xf32> to vector<128x30xf32>
    %5 = arith.addf %2, %4 : vector<128x30xf32>
    %6 = arith.negf %5 : vector<128x30xf32>
    %7 = math.exp %6 : vector<128x30xf32>
    %cst_5 = arith.constant 1.000000e+00 : f32
    %8 = vector.broadcast %cst_5 : f32 to vector<128x30xf32>
    %9 = arith.addf %8, %7 : vector<128x30xf32>
    %10 = arith.divf %8, %9 : vector<128x30xf32>
    %11 = arith.truncf %10 : vector<128x30xf32> to vector<128x30xbf16>
    %c0_6 = arith.constant 0 : index
    %c0_7 = arith.constant 0 : index
    %12 = vector.load %arg3[%c0_6, %c0_7] : memref<28x30xbf16, #tpu.memory_space<vmem>>, vector<28x30xbf16>
    %cst_8 = arith.constant dense<0.000000e+00> : vector<128x28xf32>
    %13 = tpu.matmul %11, %12, %cst_8 {dimension_numbers = #tpu.dot_dimension_numbers<[1], [1], [0], [0], [0, 0, 1, 0], [], []>} : vector<128x30xbf16>, vector<28x30xbf16>, vector<128x28xf32> -> vector<128x28xf32>
    %c1 = arith.constant 1 : index
    %c0_9 = arith.constant 0 : index
    %14 = vector.load %arg5[%c1, %c0_9] : memref<3x128xf32, #tpu.memory_space<vmem>>, vector<1x28xf32>
    %15 = vector.broadcast %14 : vector<1x28xf32> to vector<128x28xf32>
    %16 = arith.addf %13, %15 : vector<128x28xf32>
    %17 = arith.negf %16 : vector<128x28xf32>
    %18 = math.exp %17 : vector<128x28xf32>
    %cst_10 = arith.constant 1.000000e+00 : f32
    %19 = vector.broadcast %cst_10 : f32 to vector<128x28xf32>
    %20 = arith.addf %19, %18 : vector<128x28xf32>
    %21 = arith.divf %19, %20 : vector<128x28xf32>
    %22 = arith.truncf %21 : vector<128x28xf32> to vector<128x28xbf16>
    %c0_11 = arith.constant 0 : index
    %c0_12 = arith.constant 0 : index
    %23 = vector.load %arg4[%c0_11, %c0_12] : memref<128x28xbf16, #tpu.memory_space<vmem>>, vector<128x28xbf16>
    %cst_13 = arith.constant dense<0.000000e+00> : vector<128x128xf32>
    %24 = tpu.matmul %22, %23, %cst_13 {dimension_numbers = #tpu.dot_dimension_numbers<[1], [1], [0], [0], [0, 0, 1, 0], [], []>} : vector<128x28xbf16>, vector<128x28xbf16>, vector<128x128xf32> -> vector<128x128xf32>
    %c2 = arith.constant 2 : index
    %c0_14 = arith.constant 0 : index
    %25 = vector.load %arg5[%c2, %c0_14] : memref<3x128xf32, #tpu.memory_space<vmem>>, vector<1x128xf32>
    %26 = vector.broadcast %25 : vector<1x128xf32> to vector<128x128xf32>
    %27 = arith.addf %24, %26 : vector<128x128xf32>
    %cst_15 = arith.constant dense<0xFF800000> : vector<128xf32>
    %28 = vector.multi_reduction <maximumf>, %27, %cst_15 [1] : vector<128x128xf32> to vector<128xf32>
    %29 = vector.shape_cast %28 : vector<128xf32> to vector<128x1xf32>
    %30 = vector.broadcast %29 : vector<128x1xf32> to vector<128x128xf32>
    %31 = arith.subf %27, %30 : vector<128x128xf32>
    %32 = math.exp %31 : vector<128x128xf32>
    %cst_16 = arith.constant dense<0.000000e+00> : vector<128xf32>
    %33 = vector.multi_reduction <add>, %32, %cst_16 [1] : vector<128x128xf32> to vector<128xf32>
    %34 = vector.shape_cast %33 : vector<128xf32> to vector<128x1xf32>
    %35 = vector.broadcast %34 : vector<128x1xf32> to vector<128x128xf32>
    %36 = arith.divf %32, %35 : vector<128x128xf32>
    %c0_17 = arith.constant 0 : index
    %c0_18 = arith.constant 0 : index
    %37 = vector.load %arg6[%c0_17, %c0_18] : memref<128x128xf32, #tpu.memory_space<vmem>>, vector<128x128xf32>
    tpu.vector_store %arg6[%c0_17, %c0_18], %36 {strides = array<i32>} : memref<128x128xf32, #tpu.memory_space<vmem>>, vector<128x128xf32>,
    return
  }
  func.func @transform_0(%arg0: i32) -> (i32, i32) {
    %c0_i32 = arith.constant 0 : i32
    %c0_i32_0 = arith.constant 0 : i32
    return %arg0, %c0_i32 : i32, i32
  }
  func.func @transform_1(%arg0: i32) -> (i32, i32) {
    %c0_i32 = arith.constant 0 : i32
    %c0_i32_0 = arith.constant 0 : i32
    %c0_i32_1 = arith.constant 0 : i32
    return %c0_i32, %c0_i32_0 : i32, i32
  }
  func.func @transform_2(%arg0: i32) -> (i32, i32) {
    %c0_i32 = arith.constant 0 : i32
    %c0_i32_0 = arith.constant 0 : i32
    %c0_i32_1 = arith.constant 0 : i32
    return %c0_i32, %c0_i32_0 : i32, i32
  }
  func.func @transform_3(%arg0: i32) -> (i32, i32) {
    %c0_i32 = arith.constant 0 : i32
    %c0_i32_0 = arith.constant 0 : i32
    %c0_i32_1 = arith.constant 0 : i32
    return %c0_i32, %c0_i32_0 : i32, i32
  }
  func.func @transform_4(%arg0: i32) -> (i32, i32) {
    %c0_i32 = arith.constant 0 : i32
    %c0_i32_0 = arith.constant 0 : i32
    %c0_i32_1 = arith.constant 0 : i32
    return %c0_i32, %c0_i32_0 : i32, i32
  }
  func.func @transform_5(%arg0: i32) -> (i32, i32) {
    %c0_i32 = arith.constant 0 : i32
    %c0_i32_0 = arith.constant 0 : i32
    return %arg0, %c0_i32 : i32, i32
  }
}

</mosaic_0001>

<bundles_post_ra>
// kernel: mlp_forward_batched.1
= control target key start
LH: loop header
LB: loop body
LE: loop exit
PB: predicated region body
PF: predicated region fallthrough
CT: control target
= control target key end

     0   :  { %vm456_vm0 = vcmask 130048   ;;  %vm998_vm1 = vcmask 244736   ;;  %vm1291_vm2 = vcmask 228352   ;;  %s2811_s1 = inlined_call_operand.vmem [shape: bf16[30,784], index: 1, kind: input, shape index: {}]   ;;  %s2812_s0 = inlined_call_operand.vmem [shape: bf16[128,784], index: 0, kind: input, shape index: {}]   ;;  %s2813_s2 = inlined_call_operand.vmem [shape: bf16[28,30], index: 2, kind: input, shape index: {}]   ;;  %s2814_s3 = inlined_call_operand.vmem [shape: bf16[128,28], index: 3, kind: input, shape index: {}]   ;;  %s2815_s4 = inlined_call_operand.vmem [shape: f32[3,128], index: 4, kind: input, shape index: {}]   ;;  %s2816_s5 = inlined_call_operand.vmem [shape: f32[128,128], index: 5, kind: output, shape index: {}]  }
   0x1   :  { %v1936_v0 = vld [vmem:[%s2811_s1 + $0x4] ss:$28 sps:$4 sm:$0xff]   ;;  %v1939_v2 = vld [vmem:[%s2811_s1 + $0x3c] ss:$28 sps:$4 sm:$0x7f]  }
   0x2   :  { %v1938_v1 = vld [vmem:[%s2811_s1] ss:$28 sps:$4 sm:$0xff]   ;;  %487 = vmatprep.subr.bf16.mxu0 %v1936_v0  ;;  %1848 = vmatprep.subr.bf16.mxu1 %v1936_v0  ;;  %v1941_v4 = vld [vmem:[%s2811_s1 + $0x38] ss:$28 sps:$4 sm:$0x7f]  }
   0x3   :  { %488 = vmatpush1.bf16.xpose.msra.mxu0 %v1938_v1  ;;  %1850 = vmatpush1.bf16.xpose.msra.mxu1 %v1938_v1  ;;  %v1944_v3 = vld [vmem:[%s2812_s0 + $0x4] ss:$28 sps:$4 sm:$0xff]   ;;  %v1947_v5 = vld [vmem:[%s2811_s1 + $0xc] ss:$28 sps:$4 sm:$0xff]   ;;  %v1948_v8 = vld [vmem:[%s2812_s0 + $0x3c] ss:$28 sps:$4 sm:$0xff]  }
   0x4   :  { %489 = vmatprep.subr.bf16.mxu0 %v1939_v2  ;;  %1849 = vmatprep.subr.bf16.mxu1 %v1939_v2  ;;  %v1942_v6 = vld [vmem:[%s2812_s0] ss:$28 sps:$4 sm:$0xff]   ;;  %v1945_v7 = vld [vmem:[%s2811_s1 + $0x8] ss:$28 sps:$4 sm:$0xff]   ;;  %v1950_v12 = vld [vmem:[%s2812_s0 + $0x38] ss:$28 sps:$4 sm:$0xff]  }
   0x5   :  { %519 = vmatprep.mubr.bf16.mxu0 %v1944_v3  ;;  %v1956_v9 = vld [vmem:[%s2811_s1 + $0x44] ss:$28 sps:$4 sm:$0x7f]   ;;  %v1951_v13 = vld [vmem:[%s2812_s0 + $0x74] ss:$28 sps:$4 sm:$0xff]  }
   0x6   :  { %v1977_v10 = vld [vmem:[%s2812_s0 + $0xe0] ss:$28 sps:$4 sm:$0xff]   ;;  %v1965_v16 = vld [vmem:[%s2811_s1 + $0x14] ss:$28 sps:$4 sm:$0xff]   ;;  %v1957_v22 = vld [vmem:[%s2812_s0 + $0xac] ss:$28 sps:$4 sm:$0xff]  }
   0x7   :  { %v1979_v11 = vld [vmem:[%s2812_s0 + $0xe4] ss:$28 sps:$4 sm:$0xff]   ;;  %v1986_v15 = vld [vmem:[%s2812_s0 + $0x11c] ss:$28 sps:$4 sm:$0xff]   ;;  %v1992_v18 = vld [vmem:[%s2812_s0 + $0x154] ss:$28 sps:$4 sm:$0xff]  }
   0x8   :  { %v1954_v14 = vld [vmem:[%s2811_s1 + $0x40] ss:$28 sps:$4 sm:$0x7f]   ;;  %551 = vmatprep.mubr.bf16.mxu1 %v1979_v11  ;;  %v1989_v17 = vld [vmem:[%s2812_s0 + $0x118] ss:$28 sps:$4 sm:$0xff]  }
   0x9   :  { %v1996_v19 = vld [vmem:[%s2811_s1 + $0x18] ss:$28 sps:$4 sm:$0xff]   ;;  %v1953_v20 = vld [vmem:[%s2812_s0 + $0x70] ss:$28 sps:$4 sm:$0xff]   ;;  %v1959_v27 = vld [vmem:[%s2812_s0 + $0xa8] ss:$28 sps:$4 sm:$0xff]  }
   0xa   :  { %v482_v21 = vsel %vm456_vm0, %v1996_v19, 0  ;;  %v2003_v23 = vld [vmem:[%s2811_s1 + $0x50] ss:$28 sps:$4 sm:$0x7f]   ;;  %v2002_v29 = vld [vmem:[%s2812_s0 + $0x188] ss:$28 sps:$4 sm:$0xff]  }
   0xb   :  { %490 = vmatpush1.bf16.xpose.msra.mxu0 %v1941_v4  ;;  %1851 = vmatpush1.bf16.xpose.msra.mxu1 %v1941_v4  ;;  %v1995_v24 = vld [vmem:[%s2812_s0 + $0x150] ss:$28 sps:$4 sm:$0xff]   ;;  %v485_v26 = vsel %vm456_vm0, %v2003_v23, 0  ;;  %v2007_v30 = vld [vmem:[%s2812_s0 + $0x18] ss:$28 sps:$4 sm:$0xff]  }
   0xc   :  { %584 = vmatprep.subr.bf16.mxu0 %v1947_v5  ;;  %1924 = vmatprep.subr.msk.bf16.mxu1 %vm456_vm0, %v1996_v19  ;;  %v1999_v25 = vld [vmem:[%s2812_s0 + $0x18c] ss:$28 sps:$4 sm:$0xff]   ;;  %v1966_v34 = vld [vmem:[%s2812_s0 + $0x44] ss:$28 sps:$4 sm:$0xff]   ;;  %v1969_v38 = vld [vmem:[%s2812_s0 + $0x7c] ss:$28 sps:$4 sm:$0xff]  }
   0xd   :  { %v1962_v28 = vld [vmem:[%s2812_s0 + $0xc] ss:$28 sps:$4 sm:$0xff]   ;;  %v1968_v37 = vld [vmem:[%s2812_s0 + $0x40] ss:$28 sps:$4 sm:$0xff]   ;;  %v2023_v41 = vld [vmem:[%s2812_s0 + $0xf8] ss:$28 sps:$4 sm:$0xff]  }
   0xe   :  { %v1960_v31 = vld [vmem:[%s2812_s0 + $0x8] ss:$28 sps:$4 sm:$0xff]   ;;  %v1963_v32 = vld [vmem:[%s2811_s1 + $0x10] ss:$28 sps:$4 sm:$0xff]   ;;  %v2016_v40 = vld [vmem:[%s2812_s0 + $0xc0] ss:$28 sps:$4 sm:$0xff]  }
   0xf   :  { %v1983_v33 = vld [vmem:[%s2811_s1 + $0x4c] ss:$28 sps:$4 sm:$0x7f]   ;;  %v1971_v42 = vld [vmem:[%s2812_s0 + $0x78] ss:$28 sps:$4 sm:$0xff]  }
  0x10   :  { %v2008_v35 = vld [vmem:[%s2812_s0 + $0x50] ss:$28 sps:$4 sm:$0xff]   ;;  %v2015_v36 = vld [vmem:[%s2812_s0 + $0x88] ss:$28 sps:$4 sm:$0xff]   ;;  %v2032_v48 = vld [vmem:[%s2812_s0 + $0x1a0] ss:$28 sps:$4 sm:$0xff]  }
  0x11   :  { %v1981_v39 = vld [vmem:[%s2811_s1 + $0x48] ss:$28 sps:$4 sm:$0x7f]   ;;  %v1972_v43 = vld [vmem:[%s2812_s0 + $0xb4] ss:$28 sps:$4 sm:$0xff]  }
  0x12   :  { %520 = vmatmul.mubr.bf16.vlgmr.msra.gmra.mrb[0].mxu0 %v1942_v6  ;;  %552 = vmatmul.mubr.bf16.vlgmr.msra.gmra.mrb[0].mxu1 %v1977_v10  ;;  %v2024_v44 = vld [vmem:[%s2812_s0 + $0x130] ss:$28 sps:$4 sm:$0xff]   ;;  %v2031_v45 = vld [vmem:[%s2812_s0 + $0x168] ss:$28 sps:$4 sm:$0xff]   ;;  %v1988_v51 = vld [vmem:[%s2812_s0 + $0x120] ss:$28 sps:$4 sm:$0xff]  }
  0x13   :  { %585 = vmatpush1.bf16.xpose.msra.mxu0 %v1945_v7  ;;  %527 = vmatprep.mubr.bf16.mxu0 %v1948_v8  ;;  %v1974_v46 = vld [vmem:[%s2812_s0 + $0xb0] ss:$28 sps:$4 sm:$0xff]   ;;  %v1980_v49 = vld [vmem:[%s2812_s0 + $0xe8] ss:$28 sps:$4 sm:$0xff]   ;;  %v1990_v52 = vld [vmem:[%s2812_s0 + $0x15c] ss:$28 sps:$4 sm:$0xff]  }
  0x14   :  { %586 = vmatprep.subr.bf16.mxu0 %v1956_v9  ;;  %559 = vmatprep.mubr.bf16.mxu1 %v1986_v15  ;;  %v1975_v47 = vld [vmem:[%s2812_s0 + $0xec] ss:$28 sps:$4 sm:$0xff]   ;;  %v1984_v50 = vld [vmem:[%s2812_s0 + $0x124] ss:$28 sps:$4 sm:$0xff]   ;;  %v1994_v53 = vld [vmem:[%s2812_s0 + $0x158] ss:$28 sps:$4 sm:$0xff]  }
  0x15   :  { %1777 = vmatpush3.bf16.xpose.msra.mxu1 %v482_v21  ;;  %v1997_v54 = vld [vmem:[%s2812_s0 + $0x194] ss:$28 sps:$4 sm:$0xff]   ;;  %v2009_v58 = vld [vmem:[%s2812_s0 + $0x4c] ss:$28 sps:$4 sm:$0xff]   ;;  %v2012_v60 = vld [vmem:[%s2812_s0 + $0x84] ss:$28 sps:$4 sm:$0xff]  }
  0x16   :  { %1925 = vmatprep.subr.msk.bf16.mxu1 %vm456_vm0, %v2003_v23  ;;  %v2001_v55 = vld [vmem:[%s2812_s0 + $0x190] ss:$28 sps:$4 sm:$0xff]   ;;  %v2011_v59 = vld [vmem:[%s2812_s0 + $0x48] ss:$28 sps:$4 sm:$0xff]   ;;  %v2014_v61 = vld [vmem:[%s2812_s0 + $0x80] ss:$28 sps:$4 sm:$0xff]  }
  0x17   :  { %v2006_v56 = vld [vmem:[%s2812_s0 + $0x14] ss:$28 sps:$4 sm:$0xff]   ;;  %v2017_v62 = vld [vmem:[%s2812_s0 + $0xbc] ss:$28 sps:$4 sm:$0xff]   ;;  %v2025_v2 = vld [vmem:[%s2812_s0 + $0x12c] ss:$28 sps:$4 sm:$0xff]  }
  0x18   :  { %v2004_v57 = vld [vmem:[%s2812_s0 + $0x10] ss:$28 sps:$4 sm:$0xff]   ;;  %v2019_v63 = vld [vmem:[%s2812_s0 + $0xb8] ss:$28 sps:$4 sm:$0xff]   ;;  %v2027_v3 = vld [vmem:[%s2812_s0 + $0x128] ss:$28 sps:$4 sm:$0xff]  }
  0x19   :  { %v2020_v0 = vld [vmem:[%s2812_s0 + $0xf4] ss:$28 sps:$4 sm:$0xff]   ;;  %v2028_v4 = vld [vmem:[%s2812_s0 + $0x164] ss:$28 sps:$4 sm:$0xff]   ;;  %v2033_v6 = vld [vmem:[%s2812_s0 + $0x19c] ss:$28 sps:$4 sm:$0xff]  }
  0x1a   :  { %528 = vmatmul.mubr.bf16.gmra.mrb[4].mxu0 %v1950_v12  ;;  %560 = vmatmul.mubr.bf16.gmra.mrb[4].mxu1 %v1989_v17  ;;  %v2022_v1 = vld [vmem:[%s2812_s0 + $0xf0] ss:$28 sps:$4 sm:$0xff]   ;;  %v2030_v5 = vld [vmem:[%s2812_s0 + $0x160] ss:$28 sps:$4 sm:$0xff]   ;;  %v2035_v7 = vld [vmem:[%s2812_s0 + $0x198] ss:$28 sps:$4 sm:$0xff]  }
  0x1b   :  { %535 = vmatprep.mubr.bf16.mxu0 %v1951_v13  ;;  %587 = vmatpush1.bf16.xpose.msra.mxu0 %v1954_v14  ;;  %v2036_v8 = vld [vmem:[%s2813_s2] sm:$0xff]   ;;  %v2037_v10 = vld [vmem:[%s2813_s2 + $0x8] sm:$0x3f]  }
  0x1c   :  { %681 = vmatprep.subr.bf16.mxu0 %v1965_v16  ;;  %567 = vmatprep.mubr.bf16.mxu1 %v1992_v18  ;;  %v1024_v9 = vsel %vm998_vm1, %v2036_v8, 0  ;;  %v1027_v11 = vsel %vm998_vm1, %v2037_v10, 0 }
  0x1d   :  { %1779 = vmatpush3.bf16.xpose.msra.mxu1 %v485_v26 }
  0x1e   :  { %1926 = vmatprep.subr.msk.bf16.mxu1 %vm998_vm1, %v2036_v8 }
  0x22   :  { %536 = vmatmul.mubr.bf16.gmra.mrb[8].mxu0 %v1953_v20  ;;  %568 = vmatmul.mubr.bf16.gmra.mrb[8].mxu1 %v1995_v24 }
  0x23   :  { %543 = vmatprep.mubr.bf16.mxu0 %v1957_v22  ;;  %575 = vmatprep.mubr.bf16.mxu1 %v1999_v25 }
  0x2a   :  { %544 = vmatmul.mubr.bf16.gmra.mrb[12].mxu0 %v1959_v27  ;;  %576 = vmatmul.mubr.bf16.gmra.mrb[12].mxu1 %v2002_v29 }
  0x2b   :  { %616 = vmatprep.mubr.bf16.mxu0 %v1962_v28  ;;  %1780 = vmatprep.mubr.msk.bf16.mxu1 %vm456_vm0, %v2007_v30 }
  0x32   :  { %617 = vmatmul.mubr.bf16.vlgmr.msra.gmra.mrb[0].mxu0 %v1960_v31  ;;  %1781 = vmatmul.mubr.msk.bf16.vlgmr.msra.gmra.mrb[16].mxu1 %vm456_vm0, %v2008_v35 }
  0x33   :  { %682 = vmatpush1.bf16.xpose.msra.mxu0 %v1963_v32  ;;  %624 = vmatprep.mubr.bf16.mxu0 %v1966_v34 }
  0x34   :  { %683 = vmatprep.subr.bf16.mxu0 %v1983_v33  ;;  %1784 = vmatprep.mubr.msk.bf16.mxu1 %vm456_vm0, %v2015_v36 }
  0x35   :  { %1797 = vmatpush3.bf16.xpose.msra.mxu1 %v1024_v9 }
  0x36   :  { %1927 = vmatprep.subr.msk.bf16.mxu1 %vm998_vm1, %v2037_v10 }
  0x3a   :  { %625 = vmatmul.mubr.bf16.gmra.mrb[4].mxu0 %v1968_v37  ;;  %1785 = vmatmul.mubr.msk.bf16.gmra.mrb[20].mxu1 %vm456_vm0, %v2016_v40  ;;  %v2531_v40 = vld [vmem:[%s2814_s3] sm:$0xff]  }
  0x3b   :  { %632 = vmatprep.mubr.bf16.mxu0 %v1969_v38  ;;  %684 = vmatpush1.bf16.xpose.msra.mxu0 %v1981_v39 }
  0x3c   :  { %1788 = vmatprep.mubr.msk.bf16.mxu1 %vm456_vm0, %v2023_v41 }
  0x3d   :  { %1799 = vmatpush3.bf16.xpose.msra.mxu1 %v1027_v11 }
  0x3e   :  { %1928 = vmatprep.subr.msk.bf16.mxu1 %vm1291_vm2, %v2531_v40 }
  0x42   :  { %633 = vmatmul.mubr.bf16.gmra.mrb[8].mxu0 %v1971_v42  ;;  %1789 = vmatmul.mubr.msk.bf16.gmra.mrb[24].mxu1 %vm456_vm0, %v2024_v44 }
  0x43   :  { %640 = vmatprep.mubr.bf16.mxu0 %v1972_v43  ;;  %1792 = vmatprep.mubr.msk.bf16.mxu1 %vm456_vm0, %v2031_v45  ;;  %v2546_v45 = vld [vmem:[%s2815_s4] ss:$0 sm:$0xff] }
  0x4a   :  { %641 = vmatmul.mubr.bf16.gmra.mrb[12].mxu0 %v1974_v46  ;;  %1793 = vmatmul.mubr.msk.bf16.gmra.mrb[28].mxu1 %vm456_vm0, %v2032_v48 }
  0x4b   :  { %648 = vmatprep.mubr.bf16.mxu0 %v1975_v47 }
  0x52   :  { %649 = vmatmul.mubr.bf16.gmra.mrb[16].mxu0 %v1980_v49 }
  0x53   :  { %656 = vmatprep.mubr.bf16.mxu0 %v1984_v50 }
  0x5a   :  { %657 = vmatmul.mubr.bf16.gmra.mrb[20].mxu0 %v1988_v51 }
  0x5b   :  { %664 = vmatprep.mubr.bf16.mxu0 %v1990_v52 }
  0x62   :  { %665 = vmatmul.mubr.bf16.gmra.mrb[24].mxu0 %v1994_v53 }
  0x63   :  { %672 = vmatprep.mubr.bf16.mxu0 %v1997_v54 }
  0x6a   :  { %673 = vmatmul.mubr.bf16.gmra.mrb[28].mxu0 %v2001_v55 }
  0x6b   :  { %713 = vmatprep.mubr.bf16.mxu0 %v2006_v56 }
  0x72   :  { %714 = vmatmul.mubr.bf16.vlgmr.msra.gmra.mrb[0].mxu0 %v2004_v57 }
  0x73   :  { %721 = vmatprep.mubr.bf16.mxu0 %v2009_v58 }
  0x7a   :  { %722 = vmatmul.mubr.bf16.gmra.mrb[4].mxu0 %v2011_v59 }
  0x7b   :  { %729 = vmatprep.mubr.bf16.mxu0 %v2012_v60 }
  0x82   :  { %730 = vmatmul.mubr.bf16.gmra.mrb[8].mxu0 %v2014_v61 }
  0x83   :  { %737 = vmatprep.mubr.bf16.mxu0 %v2017_v62 }
  0x8a   :  { %738 = vmatmul.mubr.bf16.gmra.mrb[12].mxu0 %v2019_v63 }
  0x8b   :  { %745 = vmatprep.mubr.bf16.mxu0 %v2020_v0 }
  0x92   :  { %746 = vmatmul.mubr.bf16.gmra.mrb[16].mxu0 %v2022_v1 }
  0x93   :  { %753 = vmatprep.mubr.bf16.mxu0 %v2025_v2 }
  0x9a   :  { %754 = vmatmul.mubr.bf16.gmra.mrb[20].mxu0 %v2027_v3 }
  0x9b   :  { %761 = vmatprep.mubr.bf16.mxu0 %v2028_v4 }
  0xa2   :  { %762 = vmatmul.mubr.bf16.gmra.mrb[24].mxu0 %v2030_v5 }
  0xa3   :  { %769 = vmatprep.mubr.bf16.mxu0 %v2033_v6 }
  0xaa   :  { %770 = vmatmul.mubr.bf16.gmra.mrb[28].mxu0 %v2035_v7 }
  0xe5   :  { %v2500_v12 = vpop.f32.mrb[0].mxu1 }
  0xe6   :  { %v555_v13 = vpop.f32.mrb[1].mxu1 }
  0xe7   :  { %v2502_v14 = vpop.f32.mrb[2].mxu1 }
  0xe8   :  { %v558_v15 = vpop.f32.mrb[3].mxu1 }
  0xed   :  { %v2504_v16 = vpop.f32.mrb[4].mxu1 }
  0xee   :  { %v563_v17 = vpop.f32.mrb[5].mxu1 }
  0xef   :  { %v2506_v18 = vpop.f32.mrb[6].mxu1 }
  0xf0   :  { %v566_v19 = vpop.f32.mrb[7].mxu1 }
  0xf5   :  { %v2508_v20 = vpop.f32.mrb[8].mxu1 }
  0xf6   :  { %v571_v21 = vpop.f32.mrb[9].mxu1 }
  0xf7   :  { %v2510_v22 = vpop.f32.mrb[10].mxu1 }
  0xf8   :  { %v574_v23 = vpop.f32.mrb[11].mxu1 }
  0xfd   :  { %v2512_v24 = vpop.f32.mrb[12].mxu1 }
  0xfe   :  { %v579_v25 = vpop.f32.mrb[13].mxu1 }
  0xff   :  { %v2514_v26 = vpop.f32.mrb[14].mxu1 }
 0x100   :  { %v582_v27 = vpop.f32.mrb[15].mxu1 }
 0x105   :  { %v1782_v28 = vpop.f32.mrb[16].mxu1 }
 0x106   :  { %v812_v29 = vpop.f32.mrb[17].mxu1 }
 0x107   :  { %v1783_v30 = vpop.f32.mrb[18].mxu1 }
 0x108   :  { %v815_v31 = vpop.f32.mrb[19].mxu1 }
 0x10d   :  { %v2516_v32 = vpop.f32.mrb[20].mxu1 }
 0x10e   :  { %v828_v33 = vpop.f32.mrb[21].mxu1 }
 0x10f   :  { %v2518_v34 = vpop.f32.mrb[22].mxu1 }
 0x110   :  { %v831_v35 = vpop.f32.mrb[23].mxu1 }
 0x115   :  { %v2520_v36 = vpop.f32.mrb[24].mxu1 }
 0x116   :  { %v2522_v37 = vpop.f32.mrb[25].mxu1 }
 0x117   :  { %v2524_v38 = vpop.f32.mrb[26].mxu1 }
 0x118   :  { %v2526_v39 = vpop.f32.mrb[27].mxu1 }
 0x11d   :  { %v2533_v41 = vpop.f32.mrb[28].mxu1 }
 0x11e   :  { %v2535_v42 = vpop.f32.mrb[29].mxu1 }
 0x11f   :  { %v2539_v43 = vpop.f32.mrb[30].mxu1 }
 0x120   :  { %v2541_v44 = vpop.f32.mrb[31].mxu1 }
 0x145   :  { %v715_v46 = vpop.f32.mrb[0].mxu0 }
 0x146   :  { %v1852_v47 = vadd.f32 %v2546_v45, %v715_v46  ;;  %v717_v48 = vpop.f32.mrb[1].mxu0 }
 0x147   :  { %v718_v49 = vpop.f32.mrb[2].mxu0 }
 0x148   :  { %v1853_v50 = vadd.f32 %v2546_v45, %v718_v49  ;;  %v813_v51 = vadd.f32 %v1852_v47, %v812_v29  ;;  %v720_v52 = vpop.f32.mrb[3].mxu0 }
 0x14a   :  { %v1680_v53 = vmul.f32 -1.442695, %v813_v51  ;;  %v816_v54 = vadd.f32 %v1853_v50, %v815_v31  ;;  %v554_v50 = vadd.f32 %v2546_v45, %v2500_v12 }
 0x14c   :  { %2046 = vpow2.f32 %v1680_v53  ;;  %v1681_v55 = vmul.f32 -1.442695, %v816_v54 }
 0x14d   :  { %v723_v56 = vpop.f32.mrb[4].mxu0 }
 0x14e   :  { %2048 = vpow2.f32 %v1681_v55  ;;  %v1854_v57 = vadd.f32 %v2546_v45, %v723_v56  ;;  %v725_v58 = vpop.f32.mrb[5].mxu0 }
 0x14f   :  { %v726_v59 = vpop.f32.mrb[6].mxu0 }
 0x150   :  { %v821_v60 = vadd.f32 %v1854_v57, %v1782_v28  ;;  %v1855_v61 = vadd.f32 %v2546_v45, %v726_v59  ;;  %v728_v62 = vpop.f32.mrb[7].mxu0 }
 0x152   :  { %v1682_v63 = vmul.f32 -1.442695, %v821_v60  ;;  %v824_v0 = vadd.f32 %v1855_v61, %v1783_v30 }
 0x154   :  { %2050 = vpow2.f32 %v1682_v63  ;;  %v1683_v1 = vmul.f32 -1.442695, %v824_v0 }
 0x155   :  { %v731_v2 = vpop.f32.mrb[8].mxu0 }
 0x156   :  { %v2047_v3 = vpop.eup %2046  ;;  %2052 = vpow2.f32 %v1683_v1  ;;  %v1856_v4 = vadd.f32 %v2546_v45, %v731_v2  ;;  %v733_v5 = vpop.f32.mrb[9].mxu0  ;;  %v562_v1 = vadd.f32 %v2546_v45, %v2504_v16 }
 0x157   :  { %v923_v6 = vadd.f32 1.0, %v2047_v3  ;;  %v734_v7 = vpop.f32.mrb[10].mxu0 }
 0x158   :  { %v2049_v8 = vpop.eup %2048  ;;  %v1857_v9 = vadd.f32 %v2546_v45, %v734_v7  ;;  %v829_v10 = vadd.f32 %v1856_v4, %v828_v33  ;;  %v736_v11 = vpop.f32.mrb[11].mxu0  ;;  %v565_v4 = vadd.f32 %v2546_v45, %v2506_v18 }
 0x159   :  { %v924_v13 = vadd.f32 1.0, %v2049_v8  ;;  %2054 = vrcp.f32 %v923_v6 }
 0x15a   :  { %v1684_v15 = vmul.f32 -1.442695, %v829_v10  ;;  %v832_v17 = vadd.f32 %v1857_v9, %v831_v35  ;;  %v2039_v9 = vld [vmem:[%s2814_s3 + $0x8] sm:$0xff]  }
 0x15b   :  { %2056 = vrcp.f32 %v924_v13 }
 0x15c   :  { %2058 = vpow2.f32 %v1684_v15  ;;  %v1685_v19 = vmul.f32 -1.442695, %v832_v17 }
 0x15d   :  { %v739_v21 = vpop.f32.mrb[12].mxu0 }
 0x15e   :  { %v2051_v23 = vpop.eup %2050  ;;  %2060 = vpow2.f32 %v1685_v19  ;;  %v1858_v25 = vadd.f32 %v2546_v45, %v739_v21  ;;  %v741_v27 = vpop.f32.mrb[13].mxu0 }
 0x15f   :  { %v925_v28 = vadd.f32 1.0, %v2051_v23  ;;  %v742_v29 = vpop.f32.mrb[14].mxu0  ;;  %v570_v23 = vadd.f32 %v2546_v45, %v2508_v20  ;;  %v573_v27 = vadd.f32 %v2546_v45, %v2510_v22 }
 0x160   :  { %v2053_v30 = vpop.eup %2052  ;;  %v837_v31 = vadd.f32 %v1858_v25, %v2516_v32  ;;  %v1859_v33 = vadd.f32 %v2546_v45, %v742_v29  ;;  %v744_v46 = vpop.f32.mrb[15].mxu0  ;;  %v557_v32 = vadd.f32 %v2546_v45, %v2502_v14 }
 0x161   :  { %v926_v47 = vadd.f32 1.0, %v2053_v30  ;;  %2062 = vrcp.f32 %v925_v28  ;;  %v2040_v46 = vld [vmem:[%s2814_s3 + $0x10] sm:$0xff]  }
 0x162   :  { %v1686_v35 = vmul.f32 -1.442695, %v837_v31  ;;  %v840_v48 = vadd.f32 %v1859_v33, %v2518_v34 }
 0x163   :  { %2064 = vrcp.f32 %v926_v47  ;;  %v2055_v49 = vpop.eup %2054 }
 0x164   :  { %2066 = vpow2.f32 %v1686_v35  ;;  %v1687_v51 = vmul.f32 -1.442695, %v840_v48 }
 0x165   :  { %v2057_v52 = vpop.eup %2056  ;;  %v747_v53 = vpop.f32.mrb[16].mxu0 }
 0x166   :  { %v2059_v54 = vpop.eup %2058  ;;  %2068 = vpow2.f32 %v1687_v51  ;;  %v1861_v55 = vadd.f32 %v747_v53, %v554_v50  ;;  %v749_v56 = vpop.f32.mrb[17].mxu0  ;;  %v971_v57 = vpack.c.bf16 %v2057_v52, %v2055_v49 }
 0x167   :  { %v927_v58 = vadd.f32 1.0, %v2059_v54  ;;  %v750_v59 = vpop.f32.mrb[18].mxu0  ;;  %v578_v54 = vadd.f32 %v2546_v45, %v2512_v24 }
 0x168   :  { %v2061_v34 = vpop.eup %2060  ;;  %v1863_v60 = vadd.f32 %v750_v59, %v557_v32  ;;  %v845_v61 = vadd.f32 %v1861_v55, %v2522_v37  ;;  %v752_v62 = vpop.f32.mrb[19].mxu0  ;;  %1800 = vmatprep.mubr.msk.bf16.mxu1 %vm998_vm1, %v971_v57 }
 0x169   :  { %v928_v12 = vadd.f32 1.0, %v2061_v34  ;;  %2070 = vrcp.f32 %v927_v58 }
 0x16a   :  { %v1688_v63 = vmul.f32 -1.442695, %v845_v61  ;;  %v848_v0 = vadd.f32 %v1863_v60, %v2526_v39  ;;  %v1317_v39 = vsel %vm1291_vm2, %v2531_v40, 0  ;;  %v2041_v60 = vld [vmem:[%s2814_s3 + $0x18] sm:$0xff]  }
 0x16b   :  { %2072 = vrcp.f32 %v928_v12  ;;  %v2063_v14 = vpop.eup %2062 }
 0x16c   :  { %2074 = vpow2.f32 %v1688_v63  ;;  %v1689_v2 = vmul.f32 -1.442695, %v848_v0 }
 0x16d   :  { %v2065_v3 = vpop.eup %2064  ;;  %v755_v37 = vpop.f32.mrb[20].mxu0 }
 0x16e   :  { %v2067_v5 = vpop.eup %2066  ;;  %2076 = vpow2.f32 %v1689_v2  ;;  %v1865_v6 = vadd.f32 %v755_v37, %v562_v1  ;;  %v757_v7 = vpop.f32.mrb[21].mxu0  ;;  %v972_v8 = vpack.c.bf16 %v2065_v3, %v2063_v14  ;;  %v1326_v37 = vsel %vm1291_vm2, %v2041_v60, 0 }
 0x16f   :  { %v929_v16 = vadd.f32 1.0, %v2067_v5  ;;  %v758_v10 = vpop.f32.mrb[22].mxu0 }
 0x170   :  { %v2069_v11 = vpop.eup %2068  ;;  %v853_v13 = vadd.f32 %v1865_v6, %v2520_v36  ;;  %v1867_v15 = vadd.f32 %v758_v10, %v565_v4  ;;  %v760_v18 = vpop.f32.mrb[23].mxu0  ;;  %1801 = vmatmul.mubr.msk.bf16.vlgmr.msra.gmra.mrb[32].mxu1 %vm998_vm1, %v972_v8 }
 0x171   :  { %v930_v17 = vadd.f32 1.0, %v2069_v11  ;;  %1817 = vmatpush3.bf16.xpose.msra.mxu1 %v1317_v39  ;;  %2078 = vrcp.f32 %v929_v16 }
 0x172   :  { %v1690_v19 = vmul.f32 -1.442695, %v853_v13  ;;  %v856_v21 = vadd.f32 %v1867_v15, %v2524_v38  ;;  %1929 = vmatprep.subr.msk.bf16.mxu1 %vm1291_vm2, %v2039_v9  ;;  %v1320_v38 = vsel %vm1291_vm2, %v2039_v9, 0 }
 0x173   :  { %2080 = vrcp.f32 %v930_v17  ;;  %v2071_v40 = vpop.eup %2070 }
 0x174   :  { %2082 = vpow2.f32 %v1690_v19  ;;  %v1691_v25 = vmul.f32 -1.442695, %v856_v21 }
 0x175   :  { %v2073_v36 = vpop.eup %2072  ;;  %v763_v28 = vpop.f32.mrb[24].mxu0 }
 0x176   :  { %v2075_v29 = vpop.eup %2074  ;;  %2084 = vpow2.f32 %v1691_v25  ;;  %v1869_v30 = vadd.f32 %v763_v28, %v570_v23  ;;  %v765_v31 = vpop.f32.mrb[25].mxu0  ;;  %v973_v33 = vpack.c.bf16 %v2073_v36, %v2071_v40  ;;  %v2042_v40 = vld [vmem:[%s2814_s3 + $0x20] sm:$0xff]   ;;  %v2043_v25 = vld [vmem:[%s2814_s3 + $0x28] sm:$0xff]  }
 0x177   :  { %v931_v47 = vadd.f32 1.0, %v2075_v29  ;;  %v766_v20 = vpop.f32.mrb[26].mxu0  ;;  %v1329_v23 = vsel %vm1291_vm2, %v2042_v40, 0  ;;  %v1332_v36 = vsel %vm1291_vm2, %v2043_v25, 0  ;;  %v2045_v29 = vld [vmem:[%s2814_s3 + $0x38] sm:$0xff]  }
 0x178   :  { %v2077_v35 = vpop.eup %2076  ;;  %v1871_v48 = vadd.f32 %v766_v20, %v573_v27  ;;  %v861_v49 = vadd.f32 %v1869_v30, %v2535_v42  ;;  %v768_v50 = vpop.f32.mrb[27].mxu0  ;;  %1804 = vmatprep.mubr.msk.bf16.mxu1 %vm998_vm1, %v973_v33  ;;  %v581_v42 = vadd.f32 %v2546_v45, %v2514_v26  ;;  %v2044_v27 = vld [vmem:[%s2814_s3 + $0x30] sm:$0xff]   ;;  %v1338_v30 = vsel %vm1291_vm2, %v2045_v29, 0  ;;  %v2630_v31 = vld [vmem:[%s2815_s4 + $0x1] ss:$0 sm:$0xff] }
 0x179   :  { %v932_v22 = vadd.f32 1.0, %v2077_v35  ;;  %1819 = vmatpush3.bf16.xpose.msra.mxu1 %v1320_v38  ;;  %2086 = vrcp.f32 %v931_v47  ;;  %v1335_v28 = vsel %vm1291_vm2, %v2044_v27, 0 }
 0x17a   :  { %v1692_v51 = vmul.f32 -1.442695, %v861_v49  ;;  %v864_v52 = vadd.f32 %v1871_v48, %v2541_v44  ;;  %1930 = vmatprep.subr.msk.bf16.mxu1 %vm1291_vm2, %v2040_v46  ;;  %v1323_v44 = vsel %vm1291_vm2, %v2040_v46, 0 }
 0x17b   :  { %2088 = vrcp.f32 %v932_v22  ;;  %v2079_v53 = vpop.eup %2078 }
 0x17c   :  { %2090 = vpow2.f32 %v1692_v51  ;;  %v1693_v32 = vmul.f32 -1.442695, %v864_v52 }
 0x17d   :  { %v2081_v55 = vpop.eup %2080  ;;  %v771_v56 = vpop.f32.mrb[28].mxu0 }
 0x17e   :  { %v2083_v57 = vpop.eup %2082  ;;  %2092 = vpow2.f32 %v1693_v32  ;;  %v1873_v58 = vadd.f32 %v771_v56, %v578_v54  ;;  %v773_v59 = vpop.f32.mrb[29].mxu0  ;;  %v974_v34 = vpack.c.bf16 %v2081_v55, %v2079_v53 }
 0x17f   :  { %v933_v61 = vadd.f32 1.0, %v2083_v57  ;;  %v774_v24 = vpop.f32.mrb[30].mxu0 }
 0x180   :  { %v2085_v62 = vpop.eup %2084  ;;  %v869_v12 = vadd.f32 %v1873_v58, %v2533_v41  ;;  %v1875_v63 = vadd.f32 %v774_v24, %v581_v42  ;;  %v776_v0 = vpop.f32.mrb[31].mxu0  ;;  %1805 = vmatmul.mubr.msk.bf16.gmra.mrb[36].mxu1 %vm998_vm1, %v974_v34 }
 0x181   :  { %v934_v26 = vadd.f32 1.0, %v2085_v62  ;;  %1821 = vmatpush3.bf16.xpose.msra.mxu1 %v1323_v44  ;;  %2094 = vrcp.f32 %v933_v61 }
 0x182   :  { %v1694_v45 = vmul.f32 -1.442695, %v869_v12  ;;  %v872_v14 = vadd.f32 %v1875_v63, %v2539_v43  ;;  %1931 = vmatprep.subr.msk.bf16.mxu1 %vm1291_vm2, %v2041_v60 }
 0x183   :  { %2096 = vrcp.f32 %v934_v26  ;;  %v2087_v1 = vpop.eup %2086 }
 0x184   :  { %2098 = vpow2.f32 %v1694_v45  ;;  %v1695_v2 = vmul.f32 -1.442695, %v872_v14 }
 0x185   :  { %v2089_v3 = vpop.eup %2088 }
 0x186   :  { %v2091_v4 = vpop.eup %2090  ;;  %2100 = vpow2.f32 %v1695_v2  ;;  %v975_v41 = vpack.c.bf16 %v2089_v3, %v2087_v1 }
 0x187   :  { %v935_v5 = vadd.f32 1.0, %v2091_v4 }
 0x188   :  { %v2093_v6 = vpop.eup %2092  ;;  %1808 = vmatprep.mubr.msk.bf16.mxu1 %vm998_vm1, %v975_v41 }
 0x189   :  { %v936_v7 = vadd.f32 1.0, %v2093_v6  ;;  %1823 = vmatpush3.bf16.xpose.msra.mxu1 %v1326_v37  ;;  %2102 = vrcp.f32 %v935_v5 }
 0x18a   :  { %1932 = vmatprep.subr.msk.bf16.mxu1 %vm1291_vm2, %v2042_v40 }
 0x18b   :  { %2104 = vrcp.f32 %v936_v7  ;;  %v2095_v43 = vpop.eup %2094 }
 0x18d   :  { %v2097_v8 = vpop.eup %2096 }
 0x18e   :  { %v2099_v39 = vpop.eup %2098  ;;  %v976_v9 = vpack.c.bf16 %v2097_v8, %v2095_v43 }
 0x18f   :  { %v937_v16 = vadd.f32 1.0, %v2099_v39 }
 0x190   :  { %v2101_v10 = vpop.eup %2100  ;;  %1809 = vmatmul.mubr.msk.bf16.gmra.mrb[40].mxu1 %vm998_vm1, %v976_v9 }
 0x191   :  { %v938_v11 = vadd.f32 1.0, %v2101_v10  ;;  %2106 = vrcp.f32 %v937_v16  ;;  %1825 = vmatpush3.bf16.xpose.msra.mxu1 %v1329_v23 }
 0x192   :  { %1933 = vmatprep.subr.msk.bf16.mxu1 %vm1291_vm2, %v2043_v25 }
 0x193   :  { %2108 = vrcp.f32 %v938_v11  ;;  %v2103_v13 = vpop.eup %2102 }
 0x195   :  { %v2105_v15 = vpop.eup %2104 }
 0x196   :  { %v977_v18 = vpack.c.bf16 %v2105_v15, %v2103_v13 }
 0x198   :  { %1812 = vmatprep.mubr.msk.bf16.mxu1 %vm998_vm1, %v977_v18 }
 0x199   :  { %1827 = vmatpush3.bf16.xpose.msra.mxu1 %v1332_v36 }
 0x19a   :  { %1934 = vmatprep.subr.msk.bf16.mxu1 %vm1291_vm2, %v2044_v27 }
 0x19b   :  { %v2107_v17 = vpop.eup %2106 }
 0x19d   :  { %v2109_v19 = vpop.eup %2108 }
 0x19e   :  { %v978_v21 = vpack.c.bf16 %v2109_v19, %v2107_v17 }
 0x1a0   :  { %1813 = vmatmul.mubr.msk.bf16.gmra.mrb[44].mxu1 %vm998_vm1, %v978_v21 }
 0x1a1   :  { %1829 = vmatpush3.bf16.xpose.msra.mxu1 %v1335_v28 }
 0x1a2   :  { %1935 = vmatprep.subr.msk.bf16.mxu1 %vm1291_vm2, %v2045_v29 }
 0x1a9   :  { %1831 = vmatpush3.bf16.xpose.msra.mxu1 %v1338_v30 }
 0x243   :  { %v1802_v33 = vpop.f32.mrb[32].mxu1 }
 0x244   :  { %v1072_v38 = vadd.f32 %v1802_v33, %v2630_v31  ;;  %v1063_v46 = vpop.f32.mrb[33].mxu1 }
 0x245   :  { %v1064_v47 = vadd.f32 %v2630_v31, %v1063_v46  ;;  %v1803_v20 = vpop.f32.mrb[34].mxu1 }
 0x246   :  { %v1709_v35 = vmul.f32 -1.442695, %v1072_v38  ;;  %v1075_v48 = vadd.f32 %v1803_v20, %v2630_v31  ;;  %v1066_v49 = vpop.f32.mrb[35].mxu1 }
 0x247   :  { %v1707_v50 = vmul.f32 -1.442695, %v1064_v47  ;;  %v1067_v22 = vadd.f32 %v2630_v31, %v1066_v49 }
 0x248   :  { %2110 = vpow2.f32 %v1709_v35  ;;  %v1710_v51 = vmul.f32 -1.442695, %v1075_v48 }
 0x249   :  { %2112 = vpow2.f32 %v1707_v50  ;;  %v1708_v52 = vmul.f32 -1.442695, %v1067_v22 }
 0x24a   :  { %2114 = vpow2.f32 %v1710_v51 }
 0x24b   :  { %2116 = vpow2.f32 %v1708_v52 }
 0x252   :  { %v2111_v53 = vpop.eup %2110 }
 0x253   :  { %v2113_v54 = vpop.eup %2112  ;;  %v1176_v32 = vadd.f32 1.0, %v2111_v53  ;;  %v1806_v55 = vpop.f32.mrb[36].mxu1 }
 0x254   :  { %v2115_v42 = vpop.eup %2114  ;;  %v1174_v56 = vadd.f32 1.0, %v2113_v54  ;;  %v1088_v57 = vadd.f32 %v1806_v55, %v2630_v31  ;;  %v1079_v58 = vpop.f32.mrb[37].mxu1 }
 0x255   :  { %v2117_v59 = vpop.eup %2116  ;;  %2118 = vrcp.f32 %v1176_v32  ;;  %v1177_v34 = vadd.f32 1.0, %v2115_v42  ;;  %v1080_v44 = vadd.f32 %v2630_v31, %v1079_v58  ;;  %v1807_v60 = vpop.f32.mrb[38].mxu1 }
 0x256   :  { %2120 = vrcp.f32 %v1174_v56  ;;  %v1175_v61 = vadd.f32 1.0, %v2117_v59  ;;  %v1713_v24 = vmul.f32 -1.442695, %v1088_v57  ;;  %v1091_v62 = vadd.f32 %v1807_v60, %v2630_v31  ;;  %v1082_v12 = vpop.f32.mrb[39].mxu1 }
 0x257   :  { %2122 = vrcp.f32 %v1177_v34  ;;  %v1711_v63 = vmul.f32 -1.442695, %v1080_v44  ;;  %v1083_v0 = vadd.f32 %v2630_v31, %v1082_v12 }
 0x258   :  { %2124 = vrcp.f32 %v1175_v61  ;;  %v1714_v26 = vmul.f32 -1.442695, %v1091_v62 }
 0x259   :  { %2126 = vpow2.f32 %v1713_v24  ;;  %v1712_v45 = vmul.f32 -1.442695, %v1083_v0 }
 0x25a   :  { %2128 = vpow2.f32 %v1711_v63 }
 0x25b   :  { %2130 = vpow2.f32 %v1714_v26 }
 0x25c   :  { %2132 = vpow2.f32 %v1712_v45 }
 0x25f   :  { %v2119_v14 = vpop.eup %2118 }
 0x260   :  { %v2121_v1 = vpop.eup %2120 }
 0x261   :  { %v2123_v2 = vpop.eup %2122 }
 0x262   :  { %v2125_v3 = vpop.eup %2124  ;;  %v1223_v4 = vpack.c.bf16 %v2123_v2, %v2119_v14 }
 0x263   :  { %v2127_v41 = vpop.eup %2126  ;;  %v1810_v37 = vpop.f32.mrb[40].mxu1  ;;  %v1222_v5 = vpack.c.bf16 %v2125_v3, %v2121_v1 }
 0x264   :  { %v2129_v6 = vpop.eup %2128  ;;  %v1180_v7 = vadd.f32 1.0, %v2127_v41  ;;  %v1104_v43 = vadd.f32 %v1810_v37, %v2630_v31  ;;  %v1095_v8 = vpop.f32.mrb[41].mxu1 }
 0x265   :  { %v2131_v39 = vpop.eup %2130  ;;  %v1178_v9 = vadd.f32 1.0, %v2129_v6  ;;  %v1096_v16 = vadd.f32 %v2630_v31, %v1095_v8  ;;  %v1811_v10 = vpop.f32.mrb[42].mxu1  ;;  %1832 = vmatprep.mubr.msk.bf16.mxu1 %vm1291_vm2, %v1222_v5  ;;  %v1723_v6 = vld [vmem:[%s2815_s4 + $0x2] ss:$0 sm:$0xff] }
 0x266   :  { %v2133_v11 = vpop.eup %2132  ;;  %2134 = vrcp.f32 %v1180_v7  ;;  %v1181_v13 = vadd.f32 1.0, %v2131_v39  ;;  %v1717_v15 = vmul.f32 -1.442695, %v1104_v43  ;;  %v1107_v18 = vadd.f32 %v1811_v10, %v2630_v31  ;;  %v1098_v17 = vpop.f32.mrb[43].mxu1  ;;  %1833 = vmatmul.mubr.msk.bf16.vlgmr.msra.gmra.mrb[48].mxu1 %vm1291_vm2, %v1223_v4 }
 0x267   :  { %2136 = vrcp.f32 %v1178_v9  ;;  %v1179_v19 = vadd.f32 1.0, %v2133_v11  ;;  %v1715_v21 = vmul.f32 -1.442695, %v1096_v16  ;;  %v1099_v40 = vadd.f32 %v2630_v31, %v1098_v17 }
 0x268   :  { %2138 = vrcp.f32 %v1181_v13  ;;  %v1718_v23 = vmul.f32 -1.442695, %v1107_v18 }
 0x269   :  { %2140 = vrcp.f32 %v1179_v19  ;;  %v1716_v25 = vmul.f32 -1.442695, %v1099_v40 }
 0x26a   :  { %2142 = vpow2.f32 %v1717_v15 }
 0x26b   :  { %2144 = vpow2.f32 %v1715_v21 }
 0x26c   :  { %2146 = vpow2.f32 %v1718_v23 }
 0x26d   :  { %2148 = vpow2.f32 %v1716_v25 }
 0x270   :  { %v2135_v36 = vpop.eup %2134 }
 0x271   :  { %v2137_v27 = vpop.eup %2136 }
 0x272   :  { %v2139_v28 = vpop.eup %2138 }
 0x273   :  { %v2141_v29 = vpop.eup %2140  ;;  %v1814_v30 = vpop.f32.mrb[44].mxu1  ;;  %v1225_v33 = vpack.c.bf16 %v2139_v28, %v2135_v36 }
 0x274   :  { %v2143_v38 = vpop.eup %2142  ;;  %v1120_v46 = vadd.f32 %v1814_v30, %v2630_v31  ;;  %v1111_v47 = vpop.f32.mrb[45].mxu1  ;;  %v1224_v20 = vpack.c.bf16 %v2141_v29, %v2137_v27 }
 0x275   :  { %v2145_v35 = vpop.eup %2144  ;;  %v1184_v48 = vadd.f32 1.0, %v2143_v38  ;;  %v1112_v49 = vadd.f32 %v2630_v31, %v1111_v47  ;;  %v1815_v50 = vpop.f32.mrb[46].mxu1 }
 0x276   :  { %v2147_v22 = vpop.eup %2146  ;;  %v1182_v51 = vadd.f32 1.0, %v2145_v35  ;;  %v1123_v52 = vadd.f32 %v1815_v50, %v2630_v31  ;;  %1836 = vmatprep.mubr.msk.bf16.mxu1 %vm1291_vm2, %v1224_v20  ;;  %v1114_v53 = vpop.f32.mrb[47].mxu1  ;;  %v1721_v55 = vmul.f32 -1.442695, %v1120_v46 }
 0x277   :  { %v2149_v54 = vpop.eup %2148  ;;  %2150 = vrcp.f32 %v1184_v48  ;;  %v1185_v32 = vadd.f32 1.0, %v2147_v22  ;;  %v1115_v42 = vadd.f32 %v2630_v31, %v1114_v53  ;;  %1837 = vmatmul.mubr.msk.bf16.gmra.mrb[52].mxu1 %vm1291_vm2, %v1225_v33  ;;  %v1719_v57 = vmul.f32 -1.442695, %v1112_v49 }
 0x278   :  { %2152 = vrcp.f32 %v1182_v51  ;;  %v1183_v56 = vadd.f32 1.0, %v2149_v54  ;;  %v1722_v58 = vmul.f32 -1.442695, %v1123_v52 }
 0x279   :  { %2154 = vrcp.f32 %v1185_v32  ;;  %v1720_v59 = vmul.f32 -1.442695, %v1115_v42 }
 0x27a   :  { %2156 = vrcp.f32 %v1183_v56 }
 0x27b   :  { %2158 = vpow2.f32 %v1721_v55 }
 0x27c   :  { %2160 = vpow2.f32 %v1719_v57 }
 0x27d   :  { %2162 = vpow2.f32 %v1722_v58 }
 0x27e   :  { %2164 = vpow2.f32 %v1720_v59 }
 0x281   :  { %v2151_v34 = vpop.eup %2150 }
 0x282   :  { %v2153_v44 = vpop.eup %2152 }
 0x283   :  { %v2155_v60 = vpop.eup %2154 }
 0x284   :  { %v2157_v61 = vpop.eup %2156  ;;  %v1227_v24 = vpack.c.bf16 %v2155_v60, %v2151_v34 }
 0x285   :  { %v2159_v62 = vpop.eup %2158  ;;  %v1226_v31 = vpack.c.bf16 %v2157_v61, %v2153_v44 }
 0x286   :  { %v2161_v12 = vpop.eup %2160  ;;  %v1188_v63 = vadd.f32 1.0, %v2159_v62 }
 0x287   :  { %v2163_v0 = vpop.eup %2162  ;;  %v1186_v26 = vadd.f32 1.0, %v2161_v12  ;;  %1840 = vmatprep.mubr.msk.bf16.mxu1 %vm1291_vm2, %v1226_v31 }
 0x288   :  { %v2165_v45 = vpop.eup %2164  ;;  %2166 = vrcp.f32 %v1188_v63  ;;  %v1189_v14 = vadd.f32 1.0, %v2163_v0  ;;  %1841 = vmatmul.mubr.msk.bf16.gmra.mrb[56].mxu1 %vm1291_vm2, %v1227_v24 }
 0x289   :  { %2168 = vrcp.f32 %v1186_v26  ;;  %v1187_v1 = vadd.f32 1.0, %v2165_v45 }
 0x28a   :  { %2170 = vrcp.f32 %v1189_v14 }
 0x28b   :  { %2172 = vrcp.f32 %v1187_v1 }
 0x292   :  { %v2167_v2 = vpop.eup %2166 }
 0x293   :  { %v2169_v3 = vpop.eup %2168 }
 0x294   :  { %v2171_v4 = vpop.eup %2170 }
 0x295   :  { %v2173_v41 = vpop.eup %2172  ;;  %v1229_v37 = vpack.c.bf16 %v2171_v4, %v2167_v2 }
 0x296   :  { %v1228_v5 = vpack.c.bf16 %v2173_v41, %v2169_v3 }
 0x298   :  { %1844 = vmatprep.mubr.msk.bf16.mxu1 %vm1291_vm2, %v1228_v5 }
 0x299   :  { %1845 = vmatmul.mubr.msk.bf16.gmra.mrb[60].mxu1 %vm1291_vm2, %v1229_v37 }
 0x339   :  { %v1834_v7 = vpop.f32.mrb[48].mxu1 }
 0x33a   :  { %v1383_v43 = vadd.f32 %v1834_v7, %v1723_v6  ;;  %v1374_v8 = vpop.f32.mrb[49].mxu1 }
 0x33b   :  { %v1375_v39 = vadd.f32 %v1723_v6, %v1374_v8  ;;  %v1835_v9 = vpop.f32.mrb[50].mxu1 }
 0x33c   :  { %1441 = vmax.xlane.f32.xlu1 %v1383_v43  ;;  %v1377_v16 = vpop.f32.mrb[51].mxu1  ;;  %v1386_v10 = vadd.f32 %v1835_v9, %v1723_v6 }
 0x33d   :  { %1437 = vmax.xlane.f32.xlu0 %v1375_v39  ;;  %v1378_v11 = vadd.f32 %v1723_v6, %v1377_v16 }
 0x340   :  { %1443 = vmax.xlane.f32.xlu1 %v1386_v10 }
 0x341   :  { %1439 = vmax.xlane.f32.xlu0 %v1378_v11 }
 0x34a   :  { %v1838_v13 = vpop.f32.mrb[52].mxu1 }
 0x34b   :  { %v1399_v15 = vadd.f32 %v1838_v13, %v1723_v6  ;;  %v1390_v18 = vpop.f32.mrb[53].mxu1 }
 0x34c   :  { %v1839_v17 = vpop.f32.mrb[54].mxu1  ;;  %v2659_v40 = vadd.f32 %v1723_v6, %v1390_v18 }
 0x34d   :  { %v1402_v19 = vadd.f32 %v1839_v17, %v1723_v6  ;;  %v1393_v21 = vpop.f32.mrb[55].mxu1  ;;  %1449 = vmax.xlane.f32.xlu0 %v1399_v15 }
 0x34e   :  { %v2661_v23 = vadd.f32 %v1723_v6, %v1393_v21 }
 0x34f   :  { %1451 = vmax.xlane.f32.xlu1 %v1402_v19 }
 0x351   :  { %1445 = vmax.xlane.f32.xlu0 %v2659_v40 }
 0x353   :  { %1447 = vmax.xlane.f32.xlu1 %v2661_v23 }
 0x35b   :  { %v1842_v25 = vpop.f32.mrb[56].mxu1 }
 0x35c   :  { %v2665_v36 = vadd.f32 %v1842_v25, %v1723_v6  ;;  %v1406_v27 = vpop.f32.mrb[57].mxu1 }
 0x35d   :  { %v1843_v28 = vpop.f32.mrb[58].mxu1  ;;  %v2670_v33 = vadd.f32 %v1723_v6, %v1406_v27 }
 0x35e   :  { %v2667_v29 = vadd.f32 %v1843_v28, %v1723_v6  ;;  %v1409_v30 = vpop.f32.mrb[59].mxu1  ;;  %1457 = vmax.xlane.f32.xlu0 %v2665_v36 }
 0x35f   :  { %v2673_v38 = vadd.f32 %v1723_v6, %v1409_v30 }
 0x360   :  { %1459 = vmax.xlane.f32.xlu1 %v2667_v29 }
 0x362   :  { %1453 = vmax.xlane.f32.xlu0 %v2670_v33 }
 0x364   :  { %1455 = vmax.xlane.f32.xlu1 %v2673_v38 }
 0x36c   :  { %v1846_v46 = vpop.f32.mrb[60].mxu1 }
 0x36d   :  { %v1422_v47 = vpop.f32.mrb[61].mxu1  ;;  %v2682_v50 = vadd.f32 %v1846_v46, %v1723_v6 }
 0x36e   :  { %v2677_v20 = vadd.f32 %v1723_v6, %v1422_v47  ;;  %v1847_v35 = vpop.f32.mrb[62].mxu1 }
 0x36f   :  { %v1425_v48 = vpop.f32.mrb[63].mxu1  ;;  %v2685_v22 = vadd.f32 %v1847_v35, %v1723_v6 }
 0x370   :  { %v2679_v49 = vadd.f32 %v1723_v6, %v1425_v48  ;;  %1461 = vmax.xlane.f32.xlu0 %v2677_v20 }
 0x372   :  { %1463 = vmax.xlane.f32.xlu1 %v2679_v49 }
 0x374   :  { %1465 = vmax.xlane.f32.xlu0 %v2682_v50 }
 0x376   :  { %1467 = vmax.xlane.f32.xlu1 %v2685_v22 }
 0x3c9   :  { %v1442_v51 = vpop.xlane.xlu1 %1441 }
 0x3ca   :  { %v1471_v52 = vsub.f32 %v1383_v43, %v1442_v51  ;;  %v1438_v53 = vpop.xlane.xlu0 %1437 }
 0x3cb   :  { %v1469_v54 = vsub.f32 %v1375_v39, %v1438_v53 }
 0x3cc   :  { %v1489_v32 = vmul.f32 1.442695, %v1471_v52 }
 0x3cd   :  { %v1485_v55 = vmul.f32 1.442695, %v1469_v54  ;;  %v1444_v42 = vpop.xlane.xlu1 %1443 }
 0x3ce   :  { %2174 = vpow2.f32 %v1489_v32  ;;  %v1472_v56 = vsub.f32 %v1386_v10, %v1444_v42  ;;  %v1440_v57 = vpop.xlane.xlu0 %1439 }
 0x3cf   :  { %v1470_v58 = vsub.f32 %v1378_v11, %v1440_v57  ;;  %2176 = vpow2.f32 %v1485_v55 }
 0x3d0   :  { %v1491_v59 = vmul.f32 1.442695, %v1472_v56 }
 0x3d1   :  { %v1487_v34 = vmul.f32 1.442695, %v1470_v58 }
 0x3d2   :  { %2178 = vpow2.f32 %v1491_v59 }
 0x3d3   :  { %2180 = vpow2.f32 %v1487_v34 }
 0x3d8   :  { %v2689_v44 = vpop.eup %2174 }
 0x3d9   :  { %1521 = vadd.xlane.f32.xlu0 %v2689_v44  ;;  %v2692_v61 = vpop.eup %2176 }
 0x3da   :  { %v1450_v60 = vpop.xlane.xlu0 %1449 }
 0x3db   :  { %v1475_v24 = vsub.f32 %v1399_v15, %v1450_v60 }
 0x3dc   :  { %v2694_v62 = vpop.eup %2178  ;;  %v1452_v31 = vpop.xlane.xlu1 %1451 }
 0x3dd   :  { %v1497_v12 = vmul.f32 1.442695, %v1475_v24  ;;  %v1476_v63 = vsub.f32 %v1402_v19, %v1452_v31  ;;  %1523 = vadd.xlane.f32.xlu1 %v2694_v62  ;;  %1517 = vadd.xlane.f32.xlu0 %v2692_v61  ;;  %v2699_v14 = vpop.eup %2180 }
 0x3de   :  { %v1446_v0 = vpop.xlane.xlu0 %1445 }
 0x3df   :  { %2182 = vpow2.f32 %v1497_v12  ;;  %v1499_v26 = vmul.f32 1.442695, %v1476_v63  ;;  %v1473_v45 = vsub.f32 %v2659_v40, %v1446_v0 }
 0x3e0   :  { %v1448_v1 = vpop.xlane.xlu1 %1447 }
 0x3e1   :  { %2184 = vpow2.f32 %v1499_v26  ;;  %v1493_v2 = vmul.f32 1.442695, %v1473_v45  ;;  %v1474_v3 = vsub.f32 %v2661_v23, %v1448_v1  ;;  %1519 = vadd.xlane.f32.xlu1 %v2699_v14 }
 0x3e3   :  { %2186 = vpow2.f32 %v1493_v2  ;;  %v1495_v4 = vmul.f32 1.442695, %v1474_v3 }
 0x3e5   :  { %2188 = vpow2.f32 %v1495_v4 }
 0x3e9   :  { %v2703_v41 = vpop.eup %2182 }
 0x3ea   :  { %1529 = vadd.xlane.f32.xlu0 %v2703_v41 }
 0x3eb   :  { %v2706_v37 = vpop.eup %2184  ;;  %v1458_v5 = vpop.xlane.xlu0 %1457 }
 0x3ec   :  { %v1479_v6 = vsub.f32 %v2665_v36, %v1458_v5  ;;  %1531 = vadd.xlane.f32.xlu1 %v2706_v37 }
 0x3ed   :  { %v2710_v7 = vpop.eup %2186  ;;  %v1460_v43 = vpop.xlane.xlu1 %1459 }
 0x3ee   :  { %v1505_v8 = vmul.f32 1.442695, %v1479_v6  ;;  %v1480_v39 = vsub.f32 %v2667_v29, %v1460_v43  ;;  %1525 = vadd.xlane.f32.xlu0 %v2710_v7 }
 0x3ef   :  { %v2714_v9 = vpop.eup %2188  ;;  %v1454_v16 = vpop.xlane.xlu0 %1453 }
 0x3f0   :  { %2190 = vpow2.f32 %v1505_v8  ;;  %v1507_v10 = vmul.f32 1.442695, %v1480_v39  ;;  %v1477_v11 = vsub.f32 %v2670_v33, %v1454_v16  ;;  %1527 = vadd.xlane.f32.xlu1 %v2714_v9 }
 0x3f1   :  { %v1456_v13 = vpop.xlane.xlu1 %1455 }
 0x3f2   :  { %2192 = vpow2.f32 %v1507_v10  ;;  %v1501_v15 = vmul.f32 1.442695, %v1477_v11  ;;  %v1478_v18 = vsub.f32 %v2673_v38, %v1456_v13 }
 0x3f4   :  { %2194 = vpow2.f32 %v1501_v15  ;;  %v1503_v17 = vmul.f32 1.442695, %v1478_v18 }
 0x3f6   :  { %2196 = vpow2.f32 %v1503_v17 }
 0x3fa   :  { %v2719_v19 = vpop.eup %2190 }
 0x3fb   :  { %1537 = vadd.xlane.f32.xlu0 %v2719_v19 }
 0x3fc   :  { %v2722_v21 = vpop.eup %2192 }
 0x3fd   :  { %v1462_v40 = vpop.xlane.xlu0 %1461  ;;  %1539 = vadd.xlane.f32.xlu1 %v2722_v21 }
 0x3fe   :  { %v2725_v23 = vpop.eup %2194  ;;  %v1481_v25 = vsub.f32 %v2677_v20, %v1462_v40 }
 0x3ff   :  { %v1464_v36 = vpop.xlane.xlu1 %1463  ;;  %1533 = vadd.xlane.f32.xlu0 %v2725_v23 }
 0x400   :  { %v2729_v27 = vpop.eup %2196  ;;  %v1509_v28 = vmul.f32 1.442695, %v1481_v25  ;;  %v1482_v29 = vsub.f32 %v2679_v49, %v1464_v36 }
 0x401   :  { %v1466_v30 = vpop.xlane.xlu0 %1465  ;;  %1535 = vadd.xlane.f32.xlu1 %v2729_v27 }
 0x402   :  { %2198 = vpow2.f32 %v1509_v28  ;;  %v1511_v33 = vmul.f32 1.442695, %v1482_v29  ;;  %v1483_v38 = vsub.f32 %v2682_v50, %v1466_v30 }
 0x403   :  { %v1468_v46 = vpop.xlane.xlu1 %1467 }
 0x404   :  { %2200 = vpow2.f32 %v1511_v33  ;;  %v1513_v47 = vmul.f32 1.442695, %v1483_v38  ;;  %v1484_v20 = vsub.f32 %v2685_v22, %v1468_v46 }
 0x406   :  { %2202 = vpow2.f32 %v1513_v47  ;;  %v1515_v35 = vmul.f32 1.442695, %v1484_v20 }
 0x408   :  { %2204 = vpow2.f32 %v1515_v35 }
 0x40c   :  { %v2735_v48 = vpop.eup %2198 }
 0x40d   :  { %1541 = vadd.xlane.f32.xlu0 %v2735_v48 }
 0x40e   :  { %v2738_v49 = vpop.eup %2200 }
 0x40f   :  { %1543 = vadd.xlane.f32.xlu1 %v2738_v49 }
 0x410   :  { %v2741_v51 = vpop.eup %2202 }
 0x411   :  { %1545 = vadd.xlane.f32.xlu0 %v2741_v51 }
 0x412   :  { %v2744_v50 = vpop.eup %2204 }
 0x413   :  { %1547 = vadd.xlane.f32.xlu1 %v2744_v50 }
 0x466   :  { %v1522_v22 = vpop.xlane.xlu0 %1521 }
 0x467   :  { %2206 = vrcp.f32 %v1522_v22 }
 0x46a   :  { %v1524_v52 = vpop.xlane.xlu1 %1523  ;;  %v1518_v53 = vpop.xlane.xlu0 %1517 }
 0x46b   :  { %2208 = vrcp.f32 %v1524_v52 }
 0x46c   :  { %2210 = vrcp.f32 %v1518_v53 }
 0x46e   :  { %v1520_v54 = vpop.xlane.xlu1 %1519 }
 0x46f   :  { %2212 = vrcp.f32 %v1520_v54 }
 0x471   :  { %v2207_v32 = vpop.eup %2206 }
 0x472   :  { %v1554_v55 = vmul.f32 %v2207_v32, %v2689_v44 }
 0x474   :  { %1583 = vst [vmem:[%s2816_s5 + $0x10] sm:$0xff] %v1554_v55 }
 0x475   :  { %v2209_v42 = vpop.eup %2208 }
 0x476   :  { %v2211_v56 = vpop.eup %2210  ;;  %v1556_v57 = vmul.f32 %v2209_v42, %v2694_v62 }
 0x477   :  { %v1550_v58 = vmul.f32 %v2211_v56, %v2692_v61  ;;  %v1530_v59 = vpop.xlane.xlu0 %1529 }
 0x478   :  { %1584 = vst [vmem:[%s2816_s5 + $0x18] sm:$0xff] %v1556_v57  ;;  %2214 = vrcp.f32 %v1530_v59 }
 0x479   :  { %v2213_v34 = vpop.eup %2212  ;;  %1581 = vst [vmem:[%s2816_s5] sm:$0xff] %v1550_v58  ;;  %v1532_v44 = vpop.xlane.xlu1 %1531 }
 0x47a   :  { %v1552_v60 = vmul.f32 %v2213_v34, %v2699_v14  ;;  %2216 = vrcp.f32 %v1532_v44 }
 0x47b   :  { %v1526_v24 = vpop.xlane.xlu0 %1525 }
 0x47c   :  { %1582 = vst [vmem:[%s2816_s5 + $0x8] sm:$0xff] %v1552_v60  ;;  %2218 = vrcp.f32 %v1526_v24 }
 0x47d   :  { %v1528_v61 = vpop.xlane.xlu1 %1527 }
 0x47e   :  { %2220 = vrcp.f32 %v1528_v61 }
 0x482   :  { %v2215_v62 = vpop.eup %2214 }
 0x483   :  { %v1562_v31 = vmul.f32 %v2215_v62, %v2703_v41 }
 0x484   :  { %v2217_v12 = vpop.eup %2216 }
 0x485   :  { %1587 = vst [vmem:[%s2816_s5 + $0x30] sm:$0xff] %v1562_v31  ;;  %v1564_v63 = vmul.f32 %v2217_v12, %v2706_v37 }
 0x486   :  { %v2219_v0 = vpop.eup %2218 }
 0x487   :  { %1588 = vst [vmem:[%s2816_s5 + $0x38] sm:$0xff] %v1564_v63  ;;  %v1558_v26 = vmul.f32 %v2219_v0, %v2710_v7 }
 0x488   :  { %v2221_v45 = vpop.eup %2220  ;;  %v1538_v14 = vpop.xlane.xlu0 %1537 }
 0x489   :  { %1585 = vst [vmem:[%s2816_s5 + $0x20] sm:$0xff] %v1558_v26  ;;  %v1560_v1 = vmul.f32 %v2221_v45, %v2714_v9  ;;  %2222 = vrcp.f32 %v1538_v14 }
 0x48a   :  { %v1540_v2 = vpop.xlane.xlu1 %1539 }
 0x48b   :  { %1586 = vst [vmem:[%s2816_s5 + $0x28] sm:$0xff] %v1560_v1  ;;  %2224 = vrcp.f32 %v1540_v2 }
 0x48c   :  { %v1534_v3 = vpop.xlane.xlu0 %1533 }
 0x48d   :  { %2226 = vrcp.f32 %v1534_v3 }
 0x48e   :  { %v1536_v4 = vpop.xlane.xlu1 %1535 }
 0x48f   :  { %2228 = vrcp.f32 %v1536_v4 }
 0x493   :  { %v2223_v41 = vpop.eup %2222 }
 0x494   :  { %v1570_v37 = vmul.f32 %v2223_v41, %v2719_v19 }
 0x495   :  { %v2225_v5 = vpop.eup %2224 }
 0x496   :  { %1591 = vst [vmem:[%s2816_s5 + $0x50] sm:$0xff] %v1570_v37  ;;  %v1572_v6 = vmul.f32 %v2225_v5, %v2722_v21 }
 0x497   :  { %v2227_v7 = vpop.eup %2226 }
 0x498   :  { %1592 = vst [vmem:[%s2816_s5 + $0x58] sm:$0xff] %v1572_v6  ;;  %v1566_v43 = vmul.f32 %v2227_v7, %v2725_v23 }
 0x499   :  { %v2229_v8 = vpop.eup %2228 }
 0x49a   :  { %1589 = vst [vmem:[%s2816_s5 + $0x40] sm:$0xff] %v1566_v43  ;;  %v1568_v39 = vmul.f32 %v2229_v8, %v2729_v27  ;;  %v1542_v9 = vpop.xlane.xlu0 %1541 }
 0x49b   :  { %2230 = vrcp.f32 %v1542_v9 }
 0x49c   :  { %1590 = vst [vmem:[%s2816_s5 + $0x48] sm:$0xff] %v1568_v39  ;;  %v1544_v16 = vpop.xlane.xlu1 %1543 }
 0x49d   :  { %2232 = vrcp.f32 %v1544_v16 }
 0x49e   :  { %v1546_v10 = vpop.xlane.xlu0 %1545 }
 0x49f   :  { %2234 = vrcp.f32 %v1546_v10 }
 0x4a0   :  { %v1548_v11 = vpop.xlane.xlu1 %1547 }
 0x4a1   :  { %2236 = vrcp.f32 %v1548_v11 }
 0x4a5   :  { %v2231_v13 = vpop.eup %2230 }
 0x4a6   :  { %v1574_v15 = vmul.f32 %v2231_v13, %v2735_v48 }
 0x4a7   :  { %v2233_v18 = vpop.eup %2232 }
 0x4a8   :  { %1593 = vst [vmem:[%s2816_s5 + $0x60] sm:$0xff] %v1574_v15  ;;  %v1576_v17 = vmul.f32 %v2233_v18, %v2738_v49 }
 0x4a9   :  { %v2235_v19 = vpop.eup %2234 }
 0x4aa   :  { %1594 = vst [vmem:[%s2816_s5 + $0x68] sm:$0xff] %v1576_v17  ;;  %v1578_v21 = vmul.f32 %v2235_v19, %v2741_v51 }
 0x4ab   :  { %v2237_v40 = vpop.eup %2236 }
 0x4ac   :  { %1595 = vst [vmem:[%s2816_s5 + $0x70] sm:$0xff] %v1578_v21  ;;  %v1580_v23 = vmul.f32 %v2237_v40, %v2744_v50 }
 0x4ae   :  { %1596 = vst [vmem:[%s2816_s5 + $0x78] sm:$0xff] %v1580_v23 }

</bundles_post_ra>
